<compile_context>
chip_gen: v7x
topology: tpu7x:2x2x1
jax: 0.10.0
libtpu: 0.0.40
codegen_flags: <defaults>
</compile_context>

<pallas_src>
import functools

import jax
import jax.numpy as jnp
from jax.experimental import pallas as pl
from jax.experimental.pallas import tpu as pltpu

STATE = 8
ACTION = 4
H1, H2, H3 = 25, 50, 25
LANES = 128            # padded feature width for the hidden tiles
OUT_LANES = 8          # packed output width (4 actor log-probs + critic + pad)
NEG_BIG = -1e30        # mask value for padded actor logits


def _actor_critic_kernel(x_ref,
                         w1_ref, b1_ref,
                         w2_ref, b2_ref,
                         wh_ref, bh_ref,
                         wc_ref,
                         out_ref):
    x = x_ref[...].astype(jnp.float32)

    # F.normalize(x, dim=0) per row: x * rsqrt(max(||x||^2, 1e-24))  (EUP rsqrt).
    ss = jnp.sum(x * x, axis=-1, keepdims=True)
    xn = x * jax.lax.rsqrt(jnp.maximum(ss, 1e-24))

    # Trunk: bf16 MXU matmuls with f32 accumulation; biases added in f32.
    y = jnp.dot(xn.astype(jnp.bfloat16), w1_ref[...],
                preferred_element_type=jnp.float32) + b1_ref[...]
    y = jnp.maximum(y, 0.0)
    y = jnp.dot(y.astype(jnp.bfloat16), w2_ref[...],
                preferred_element_type=jnp.float32) + b2_ref[...]
    y = jnp.maximum(y, 0.0)

    # Fused head matmul: lanes [0:4) actor logits, [4:29) l3 pre-activation,
    # lane 127 == 1.0 (constant lane carrying the critic bias), rest exactly 0.
    h = jnp.dot(y.astype(jnp.bfloat16), wh_ref[...],
                preferred_element_type=jnp.float32) + bh_ref[...]

    # Critic: relu(l3) then a rank-1 projection done as a VPU multiply +
    # XLU lane-reduce (no 128x128 MXU matmul).  wc_ref is zero outside the
    # l3 lanes and holds the critic bias at lane 127 (paired with the
    # constant-1 lane of h), so the sum already includes the bias.
    c = jnp.maximum(h, 0.0)
    v = jnp.tanh(jnp.sum(c * wc_ref[...], axis=-1, keepdims=True))

    # Actor: numerically stable log-softmax over the 4 action lanes, computed
    # on the narrow 8-lane slice that is actually written back.
    h8 = h[:, :OUT_LANES]
    lane8 = jax.lax.broadcasted_iota(jnp.int32, h8.shape, 1)
    logits8 = jnp.where(lane8 < ACTION, h8, NEG_BIG)
    m = jnp.max(logits8, axis=-1, keepdims=True)
    s = jnp.sum(jnp.exp(logits8 - m), axis=-1, keepdims=True)
    log_actor8 = h8 - m - jnp.log(s)

    # Packed output: cols [0:4) = actor log-probs, cols [4:8) = critic value.
    out_ref[...] = jnp.where(lane8 < ACTION, log_actor8, v)


def init_params(key):
    """PyTorch nn.Linear-style init: U(-1/sqrt(fan_in), 1/sqrt(fan_in)).
    Weights stored transposed as (in, out); biases as (1, out)."""
    def linear(k, fan_in, fan_out):
        kw, kb = jax.random.split(k)
        bound = 1.0 / jnp.sqrt(jnp.float32(fan_in))
        w = jax.random.uniform(kw, (fan_in, fan_out), jnp.float32, -bound, bound)
        b = jax.random.uniform(kb, (1, fan_out), jnp.float32, -bound, bound)
        return w, b

    k1, k2, k3, k4, k5 = jax.random.split(key, 5)
    w1, b1 = linear(k1, STATE, H1)     # l1
    w2, b2 = linear(k2, H1, H2)        # l2
    wa, ba = linear(k3, H2, ACTION)    # actor_lin1
    w3, b3 = linear(k4, H2, H3)        # l3
    wc, bc = linear(k5, H3, 1)         # critic_lin1
    return (w1, b1, w2, b2, wa, ba, w3, b3, wc, bc)


def pack_params(params):
    """Zero-pad to 128 lanes, cast matmul weights to bf16, fuse the two head
    weights, and turn critic_lin1 into a (1,128) dot-reduce row."""
    (w1, b1, w2, b2, wa, ba, w3, b3, wc, bc) = params

    def pad2(a, rows, cols, dtype):
        out = jnp.zeros((rows, cols), dtype)
        return out.at[: a.shape[0], : a.shape[1]].set(a.astype(dtype))

    w1p = pad2(w1, STATE, LANES, jnp.bfloat16)     # (8, 128)   bf16
    b1p = pad2(b1, 1, LANES, jnp.float32)          # (1, 128)   f32
    w2p = pad2(w2, LANES, LANES, jnp.bfloat16)     # (128, 128) bf16
    b2p = pad2(b2, 1, LANES, jnp.float32)          # (1, 128)   f32

    # Fused head weight: cols [0:4) = actor_lin1, cols [4:29) = l3.
    wh = jnp.zeros((LANES, LANES), jnp.bfloat16)
    wh = wh.at[:H2, :ACTION].set(wa.astype(jnp.bfloat16))
    wh = wh.at[:H2, ACTION:ACTION + H3].set(w3.astype(jnp.bfloat16))
    bh = jnp.zeros((1, LANES), jnp.float32)
    bh = bh.at[:, :ACTION].set(ba)
    bh = bh.at[:, ACTION:ACTION + H3].set(b3)
    bh = bh.at[0, LANES - 1].set(1.0)              # constant-1 lane for critic bias

    # Critic dot-reduce row: l3 lanes carry critic_lin1 weights, lane 127
    # carries the critic bias (multiplied by the constant-1 lane above).
    wcr = jnp.zeros((1, LANES), jnp.float32)
    wcr = wcr.at[0, ACTION:ACTION + H3].set(wc[:, 0])
    wcr = wcr.at[0, LANES - 1].set(bc[0, 0])

    return (w1p, b1p, w2p, b2p, wh, bh, wcr)


def _round_up(n, m):
    return ((n + m - 1) // m) * m


def _choose_tm(batch_rows, tm):
    """Batch-tile size: multiple of 8, <= tm, and small enough that the grid
    has >= 2 steps whenever the batch allows it (v7x megacore + pipelining)."""
    tm = _round_up(max(int(tm), 8), 8)
    b8 = _round_up(batch_rows, 8)
    half = _round_up((b8 + 1) // 2, 8)
    return max(8, min(tm, half))


@functools.partial(jax.jit, static_argnames=("tm",))
def actor_critic_forward(x, packed_params, tm=2048):
    """x: (B, STATE) float32. Returns (actor_logprobs (B,4), critic (B,1))."""
    B = x.shape[0]
    Bp = max(B, 8)                       # need >= 8 sublane rows for one block
    if Bp != B:
        x = jnp.pad(x, ((0, Bp - B), (0, 0)))
    TM = _choose_tm(Bp, tm)
    grid = pl.cdiv(Bp, TM)               # ragged last block handled by Pallas

    const = lambda i: (0, 0)             # weights: VMEM-resident, DMA'd once
    cost = pl.CostEstimate(
        flops=2 * Bp * (STATE * LANES + 2 * LANES * LANES + LANES),
        transcendentals=Bp * (OUT_LANES + 3),
        bytes_accessed=Bp * (STATE + OUT_LANES) * 4
        + STATE * LANES * 2 + 2 * LANES * LANES * 2 + 4 * LANES * 4,
    )

    out = pl.pallas_call(
        _actor_critic_kernel,
        out_shape=jax.ShapeDtypeStruct((Bp, OUT_LANES), jnp.float32),
        grid_spec=pltpu.PrefetchScalarGridSpec(
            num_scalar_prefetch=0,
            grid=(grid,),
            in_specs=[
                pl.BlockSpec((TM, STATE), lambda i: (i, 0)),     # x tile
                pl.BlockSpec((STATE, LANES), const),             # w1 (bf16)
                pl.BlockSpec((1, LANES), const),                 # b1
                pl.BlockSpec((LANES, LANES), const),             # w2 (bf16)
                pl.BlockSpec((1, LANES), const),                 # b2
                pl.BlockSpec((LANES, LANES), const),             # fused head w (bf16)
                pl.BlockSpec((1, LANES), const),                 # fused head b
                pl.BlockSpec((1, LANES), const),                 # critic row
            ],
            out_specs=pl.BlockSpec((TM, OUT_LANES), lambda i: (i, 0)),
        ),
        compiler_params=pltpu.CompilerParams(
            dimension_semantics=("parallel",)),
        cost_estimate=cost,
    )(x, *packed_params)

    if Bp != B:
        out = out[:B]
    # Callers that want to avoid these slices can consume the packed (B, 8)
    # layout directly: cols [0:4) = actor log-probs, col 4 = critic value.
    actor = out[:, :ACTION]
    critic = out[:, ACTION:ACTION + 1]
    return actor, critic


def _reference_forward(x, params):
    """Pure-JAX f32 reference (unpadded params) for a sanity check."""
    (w1, b1, w2, b2, wa, ba, w3, b3, wc, bc) = params
    nrm = jnp.sqrt(jnp.sum(x * x, axis=-1, keepdims=True))
    xn = x / jnp.maximum(nrm, 1e-12)
    y = jax.nn.relu(xn @ w1 + b1)
    y = jax.nn.relu(y @ w2 + b2)
    actor = jax.nn.log_softmax(y @ wa + ba, axis=-1)
    c = jax.nn.relu(y @ w3 + b3)
    critic = jnp.tanh(c @ wc + bc)
    return actor, critic


if __name__ == "__main__":
    key = jax.random.PRNGKey(0)
    k_x, k_p = jax.random.split(key)

    params = init_params(k_p)
    packed = pack_params(params)

    # Small-batch check (single grid step; <8 rows padded inside the wrapper).
    batch = 4
    x = jax.random.normal(k_x, (batch, STATE), dtype=jnp.float32)
    actor, critic = actor_critic_forward(x, packed)
    jax.block_until_ready((actor, critic))

    ref_actor, ref_critic = _reference_forward(x, params)
    assert actor.shape == (batch, ACTION) and critic.shape == (batch, 1)
    # bf16 matmuls -> relaxed tolerance vs. the f32 reference.
    assert jnp.allclose(actor, ref_actor, atol=2e-2, rtol=2e-2)
    assert jnp.allclose(critic, ref_critic, atol=2e-2, rtol=2e-2)

    # Multi-tile check (exercises the batch grid + ragged last block).
    batch2 = 1000
    x2 = jax.random.normal(jax.random.PRNGKey(1), (batch2, STATE), dtype=jnp.float32)
    a2, c2 = actor_critic_forward(x2, packed, tm=256)
    jax.block_until_ready((a2, c2))
    ra2, rc2 = _reference_forward(x2, params)
    assert a2.shape == (batch2, ACTION) and c2.shape == (batch2, 1)
    assert jnp.allclose(a2, ra2, atol=2e-2, rtol=2e-2)
    assert jnp.allclose(c2, rc2, atol=2e-2, rtol=2e-2)

    # TODO(synk): save()/load() (torch checkpoint I/O) have no Pallas equivalent.
    print("KERNEL_OK")
</pallas_src>

<mosaic_0001>
module attributes {stable_mosaic.version = 11 : i64} {
  func.func @_actor_critic_kernel(%arg0: i32, %arg1: memref<8x8xf32, #tpu.memory_space<vmem>>, %arg2: memref<8x128xbf16, #tpu.memory_space<vmem>>, %arg3: memref<1x128xf32, #tpu.memory_space<vmem>>, %arg4: memref<128x128xbf16, #tpu.memory_space<vmem>>, %arg5: memref<1x128xf32, #tpu.memory_space<vmem>>, %arg6: memref<128x128xbf16, #tpu.memory_space<vmem>>, %arg7: memref<1x128xf32, #tpu.memory_space<vmem>>, %arg8: memref<1x128xf32, #tpu.memory_space<vmem>>, %arg9: memref<8x8xf32, #tpu.memory_space<vmem>>) attributes {dimension_semantics = [#tpu.dimension_semantics<parallel>], iteration_bounds = array<i64: 1>, scalar_prefetch = 0 : i64, scratch_operands = 0 : i64, tpu.core_type = #tpu.core_type<tc>, window_params = [{transform_indices = @transform_0, window_bounds = array<i64: 8, 8>}, {pipeline_mode = #tpu.pipeline_mode<synchronous>, transform_indices = @transform_1, window_bounds = array<i64: 8, 128>}, {pipeline_mode = #tpu.pipeline_mode<synchronous>, transform_indices = @transform_2, window_bounds = array<i64: 1, 128>}, {pipeline_mode = #tpu.pipeline_mode<synchronous>, transform_indices = @transform_3, window_bounds = array<i64: 128, 128>}, {pipeline_mode = #tpu.pipeline_mode<synchronous>, transform_indices = @transform_4, window_bounds = array<i64: 1, 128>}, {pipeline_mode = #tpu.pipeline_mode<synchronous>, transform_indices = @transform_5, window_bounds = array<i64: 128, 128>}, {pipeline_mode = #tpu.pipeline_mode<synchronous>, transform_indices = @transform_6, window_bounds = array<i64: 1, 128>}, {pipeline_mode = #tpu.pipeline_mode<synchronous>, transform_indices = @transform_7, window_bounds = array<i64: 1, 128>}, {transform_indices = @transform_8, window_bounds = array<i64: 8, 8>}]} {
    %c0 = arith.constant 0 : index
    %c0_0 = arith.constant 0 : index
    %0 = vector.load %arg1[%c0, %c0_0] : memref<8x8xf32, #tpu.memory_space<vmem>>, vector<8x8xf32>
    %1 = arith.mulf %0, %0 : vector<8x8xf32>
    %cst = arith.constant dense<0.000000e+00> : vector<8xf32>
    %2 = vector.multi_reduction <add>, %1, %cst [1] : vector<8x8xf32> to vector<8xf32>
    %3 = vector.shape_cast %2 : vector<8xf32> to vector<8x1xf32>
    %cst_1 = arith.constant 1.000000e-24 : f32
    %4 = vector.broadcast %cst_1 : f32 to vector<8x1xf32>
    %5 = arith.maximumf %3, %4 : vector<8x1xf32>
    %6 = math.rsqrt %5 : vector<8x1xf32>
    %7 = vector.broadcast %6 : vector<8x1xf32> to vector<8x8xf32>
    %8 = arith.mulf %0, %7 : vector<8x8xf32>
    %9 = arith.truncf %8 : vector<8x8xf32> to vector<8x8xbf16>
    %c0_2 = arith.constant 0 : index
    %c0_3 = arith.constant 0 : index
    %10 = vector.load %arg2[%c0_2, %c0_3] : memref<8x128xbf16, #tpu.memory_space<vmem>>, vector<8x128xbf16>
    %cst_4 = arith.constant dense<0.000000e+00> : vector<8x128xf32>
    %11 = tpu.matmul %9, %10, %cst_4 {dimension_numbers = #tpu.dot_dimension_numbers<[1], [0], [0], [1], [0, 0, 1, 1], [], []>} : vector<8x8xbf16>, vector<8x128xbf16>, vector<8x128xf32> -> vector<8x128xf32>
    %c0_5 = arith.constant 0 : index
    %c0_6 = arith.constant 0 : index
    %12 = vector.load %arg3[%c0_5, %c0_6] : memref<1x128xf32, #tpu.memory_space<vmem>>, vector<1x128xf32>
    %13 = vector.broadcast %12 : vector<1x128xf32> to vector<8x128xf32>
    %14 = arith.addf %11, %13 : vector<8x128xf32>
    %cst_7 = arith.constant 0.000000e+00 : f32
    %15 = vector.broadcast %cst_7 : f32 to vector<8x128xf32>
    %16 = arith.maximumf %14, %15 : vector<8x128xf32>
    %17 = arith.truncf %16 : vector<8x128xf32> to vector<8x128xbf16>
    %c0_8 = arith.constant 0 : index
    %c0_9 = arith.constant 0 : index
    %18 = vector.load %arg4[%c0_8, %c0_9] : memref<128x128xbf16, #tpu.memory_space<vmem>>, vector<128x128xbf16>
    %cst_10 = arith.constant dense<0.000000e+00> : vector<8x128xf32>
    %19 = tpu.matmul %17, %18, %cst_10 {dimension_numbers = #tpu.dot_dimension_numbers<[1], [0], [0], [1], [0, 0, 1, 1], [], []>} : vector<8x128xbf16>, vector<128x128xbf16>, vector<8x128xf32> -> vector<8x128xf32>
    %c0_11 = arith.constant 0 : index
    %c0_12 = arith.constant 0 : index
    %20 = vector.load %arg5[%c0_11, %c0_12] : memref<1x128xf32, #tpu.memory_space<vmem>>, vector<1x128xf32>
    %21 = vector.broadcast %20 : vector<1x128xf32> to vector<8x128xf32>
    %22 = arith.addf %19, %21 : vector<8x128xf32>
    %cst_13 = arith.constant 0.000000e+00 : f32
    %23 = vector.broadcast %cst_13 : f32 to vector<8x128xf32>
    %24 = arith.maximumf %22, %23 : vector<8x128xf32>
    %25 = arith.truncf %24 : vector<8x128xf32> to vector<8x128xbf16>
    %c0_14 = arith.constant 0 : index
    %c0_15 = arith.constant 0 : index
    %26 = vector.load %arg6[%c0_14, %c0_15] : memref<128x128xbf16, #tpu.memory_space<vmem>>, vector<128x128xbf16>
    %cst_16 = arith.constant dense<0.000000e+00> : vector<8x128xf32>
    %27 = tpu.matmul %25, %26, %cst_16 {dimension_numbers = #tpu.dot_dimension_numbers<[1], [0], [0], [1], [0, 0, 1, 1], [], []>} : vector<8x128xbf16>, vector<128x128xbf16>, vector<8x128xf32> -> vector<8x128xf32>
    %c0_17 = arith.constant 0 : index
    %c0_18 = arith.constant 0 : index
    %28 = vector.load %arg7[%c0_17, %c0_18] : memref<1x128xf32, #tpu.memory_space<vmem>>, vector<1x128xf32>
    %29 = vector.broadcast %28 : vector<1x128xf32> to vector<8x128xf32>
    %30 = arith.addf %27, %29 : vector<8x128xf32>
    %cst_19 = arith.constant 0.000000e+00 : f32
    %31 = vector.broadcast %cst_19 : f32 to vector<8x128xf32>
    %32 = arith.maximumf %30, %31 : vector<8x128xf32>
    %c0_20 = arith.constant 0 : index
    %c0_21 = arith.constant 0 : index
    %33 = vector.load %arg8[%c0_20, %c0_21] : memref<1x128xf32, #tpu.memory_space<vmem>>, vector<1x128xf32>
    %34 = vector.broadcast %33 : vector<1x128xf32> to vector<8x128xf32>
    %35 = arith.mulf %32, %34 : vector<8x128xf32>
    %cst_22 = arith.constant dense<0.000000e+00> : vector<8xf32>
    %36 = vector.multi_reduction <add>, %35, %cst_22 [1] : vector<8x128xf32> to vector<8xf32>
    %37 = vector.shape_cast %36 : vector<8xf32> to vector<8x1xf32>
    %38 = math.tanh %37 : vector<8x1xf32>
    %39 = vector.extract_strided_slice %30 {offsets = [0, 0], sizes = [8, 8], strides = [1, 1]} : vector<8x128xf32> to vector<8x8xf32>
    %40 = tpu.iota {dimensions = array<i32: 1>} : vector<8x8xi32>
    %c4_i32 = arith.constant 4 : i32
    %41 = vector.broadcast %c4_i32 : i32 to vector<8x8xi32>
    %42 = arith.cmpi slt, %40, %41 : vector<8x8xi32>
    %cst_23 = arith.constant -1.000000e+30 : f32
    %43 = vector.broadcast %cst_23 : f32 to vector<8x8xf32>
    %44 = arith.select %42, %39, %43 : vector<8x8xi1>, vector<8x8xf32>
    %cst_24 = arith.constant dense<0xFF800000> : vector<8xf32>
    %45 = vector.multi_reduction <maximumf>, %44, %cst_24 [1] : vector<8x8xf32> to vector<8xf32>
    %46 = vector.shape_cast %45 : vector<8xf32> to vector<8x1xf32>
    %47 = vector.broadcast %46 : vector<8x1xf32> to vector<8x8xf32>
    %48 = arith.subf %44, %47 : vector<8x8xf32>
    %49 = math.exp %48 : vector<8x8xf32>
    %cst_25 = arith.constant dense<0.000000e+00> : vector<8xf32>
    %50 = vector.multi_reduction <add>, %49, %cst_25 [1] : vector<8x8xf32> to vector<8xf32>
    %51 = vector.shape_cast %50 : vector<8xf32> to vector<8x1xf32>
    %52 = vector.broadcast %46 : vector<8x1xf32> to vector<8x8xf32>
    %53 = arith.subf %39, %52 : vector<8x8xf32>
    %54 = math.log %51 : vector<8x1xf32>
    %55 = vector.broadcast %54 : vector<8x1xf32> to vector<8x8xf32>
    %56 = arith.subf %53, %55 : vector<8x8xf32>
    %c4_i32_26 = arith.constant 4 : i32
    %57 = vector.broadcast %c4_i32_26 : i32 to vector<8x8xi32>
    %58 = arith.cmpi slt, %40, %57 : vector<8x8xi32>
    %59 = vector.shape_cast %38 : vector<8x1xf32> to vector<8x1xf32>
    %60 = vector.broadcast %59 : vector<8x1xf32> to vector<8x8xf32>
    %61 = arith.select %58, %56, %60 : vector<8x8xi1>, vector<8x8xf32>
    %c0_27 = arith.constant 0 : index
    %c0_28 = arith.constant 0 : index
    %62 = vector.load %arg9[%c0_27, %c0_28] : memref<8x8xf32, #tpu.memory_space<vmem>>, vector<8x8xf32>
    tpu.vector_store %arg9[%c0_27, %c0_28], %61 {strides = array<i32>} : memref<8x8xf32, #tpu.memory_space<vmem>>, vector<8x8xf32>,
    return
  }
  func.func @transform_0(%arg0: i32) -> (i32, i32) {
    %c0_i32 = arith.constant 0 : i32
    %c0_i32_0 = arith.constant 0 : i32
    return %arg0, %c0_i32 : i32, i32
  }
  func.func @transform_1(%arg0: i32) -> (i32, i32) {
    %c0_i32 = arith.constant 0 : i32
    %c0_i32_0 = arith.constant 0 : i32
    %c0_i32_1 = arith.constant 0 : i32
    return %c0_i32, %c0_i32_0 : i32, i32
  }
  func.func @transform_2(%arg0: i32) -> (i32, i32) {
    %c0_i32 = arith.constant 0 : i32
    %c0_i32_0 = arith.constant 0 : i32
    %c0_i32_1 = arith.constant 0 : i32
    return %c0_i32, %c0_i32_0 : i32, i32
  }
  func.func @transform_3(%arg0: i32) -> (i32, i32) {
    %c0_i32 = arith.constant 0 : i32
    %c0_i32_0 = arith.constant 0 : i32
    %c0_i32_1 = arith.constant 0 : i32
    return %c0_i32, %c0_i32_0 : i32, i32
  }
  func.func @transform_4(%arg0: i32) -> (i32, i32) {
    %c0_i32 = arith.constant 0 : i32
    %c0_i32_0 = arith.constant 0 : i32
    %c0_i32_1 = arith.constant 0 : i32
    return %c0_i32, %c0_i32_0 : i32, i32
  }
  func.func @transform_5(%arg0: i32) -> (i32, i32) {
    %c0_i32 = arith.constant 0 : i32
    %c0_i32_0 = arith.constant 0 : i32
    %c0_i32_1 = arith.constant 0 : i32
    return %c0_i32, %c0_i32_0 : i32, i32
  }
  func.func @transform_6(%arg0: i32) -> (i32, i32) {
    %c0_i32 = arith.constant 0 : i32
    %c0_i32_0 = arith.constant 0 : i32
    %c0_i32_1 = arith.constant 0 : i32
    return %c0_i32, %c0_i32_0 : i32, i32
  }
  func.func @transform_7(%arg0: i32) -> (i32, i32) {
    %c0_i32 = arith.constant 0 : i32
    %c0_i32_0 = arith.constant 0 : i32
    %c0_i32_1 = arith.constant 0 : i32
    return %c0_i32, %c0_i32_0 : i32, i32
  }
  func.func @transform_8(%arg0: i32) -> (i32, i32) {
    %c0_i32 = arith.constant 0 : i32
    %c0_i32_0 = arith.constant 0 : i32
    return %arg0, %c0_i32 : i32, i32
  }
}

</mosaic_0001>

<bundles_post_ra>
// kernel: actor_critic_forward.1
= control target key start
LH: loop header
LB: loop body
LE: loop exit
PB: predicated region body
PF: predicated region fallthrough
CT: control target
= control target key end

     0   :  { %13 = vsyncpa [#allocation3], 0  ;;  %s677_s0 = inlined_call_operand.vmem [shape: f32[8,8], index: 0, kind: input, shape index: {}]   ;;  %s678_s1 = inlined_call_operand.vmem [shape: bf16[8,128], index: 1, kind: input, shape index: {}]   ;;  %s679_s2 = inlined_call_operand.vmem [shape: f32[1,128], index: 2, kind: input, shape index: {}]   ;;  %s680_s3 = inlined_call_operand.hbm [shape: bf16[128,128], index: 3, kind: input, shape index: {}]   ;;  %s681_s4 = inlined_call_operand.vmem [shape: f32[1,128], index: 4, kind: input, shape index: {}]   ;;  %s682_s5 = inlined_call_operand.hbm [shape: bf16[128,128], index: 5, kind: input, shape index: {}]   ;;  %s683_s6 = inlined_call_operand.vmem [shape: f32[1,128], index: 6, kind: input, shape index: {}]   ;;  %s684_s7 = inlined_call_operand.vmem [shape: f32[1,128], index: 7, kind: input, shape index: {}]   ;;  %s685_s8 = inlined_call_operand.vmem [shape: f32[8,8], index: 8, kind: output, shape index: {}]  }
   0x1   :  { %14 = vsyncpa [#allocation5], 0  ;;  %s551_s27 = smov [#allocation2]   ;;  %s503_s9 = scalar_lea.hbm %s680_s3, 1024 }
   0x2   :  { %s26_s28 = sshll.u32 %s551_s27, 4  ;;  %p504_p0 = scmp.ne.s32.totalorder %s680_s3, %s503_s9  ;;  %s27_s28 = int_to_ptr.vmem [resolvable:$true] %s26_s28 }
   0x3   :  { %p507_p1 = scmp.lt.u32.totalorder %s503_s9, %s680_s3 }
   0x5   :  { %p509_p2 = pnand %p507_p1, %p504_p0 }
   0x7   :  { %512 = shalt.err (!%p509_p2)
}
   0x8   :  { %s513_s14 = scalar_lea.vmem %s27_s28, 1024  ;;  %p518_p4 = scmp.lt.s32.totalorder %s27_s28, %s27_s28 }
   0x9   :  { %p514_p3 = scmp.ne.s32.totalorder %s27_s28, %s513_s14  ;;  %p519_p5 = scmp.lt.s32.totalorder %s513_s14, %s513_s14 }
   0xb   :  { %p520_p6 = por %p519_p5, %p518_p4 }
   0xd   :  { %p521_p7 = pnand %p520_p6, %p514_p3 }
   0xf   :  { %524 = shalt.err (!%p521_p7)
}
  0x10   :  { %s552_s15 = smov 64   ;;  %s553_s16 = smov 4  }
  0x11   :  { %32 = dma.hbm_to_vmem [thread:$0]  %s680_s3, 1024, %s27_s28, [#allocation3], %s552_s15, %s552_s15, %s553_s16  }
  0x12   :  { %s554_s19 = smov [#allocation4]   ;;  %s525_s23 = scalar_lea.hbm %s682_s5, 1024 }
  0x13   :  { %s40_s20 = sshll.u32 %s554_s19, 4  ;;  %p526_p8 = scmp.ne.s32.totalorder %s682_s5, %s525_s23  ;;  %s41_s20 = int_to_ptr.vmem [resolvable:$true] %s40_s20 }
  0x14   :  { %p529_p9 = scmp.lt.u32.totalorder %s525_s23, %s682_s5 }
  0x16   :  { %p531_p10 = pnand %p529_p9, %p526_p8 }
  0x18   :  { %534 = shalt.err (!%p531_p10)
}
  0x19   :  { %s535_s29 = scalar_lea.vmem %s41_s20, 1024  ;;  %p540_p12 = scmp.lt.s32.totalorder %s41_s20, %s41_s20 }
  0x1a   :  { %p536_p11 = scmp.ne.s32.totalorder %s41_s20, %s535_s29  ;;  %p541_p13 = scmp.lt.s32.totalorder %s535_s29, %s535_s29 }
  0x1c   :  { %p542_p0 = por %p541_p13, %p540_p12 }
  0x1e   :  { %p543_p1 = pnand %p542_p0, %p536_p11 }
  0x20   :  { %546 = shalt.err (!%p543_p1)
}
  0x21   :  { %46 = dma.hbm_to_vmem [thread:$0]  %s682_s5, 1024, %s41_s20, [#allocation5], %s552_s15, %s552_s15, %s553_s16  }
  0x22   :  { %547 = dma.done.wait [#allocation3], 1024  }
  0x23   :  { %548 = vsyncadd [#allocation3], 4294966272 }
  0x24   :  { %549 = dma.done.wait [#allocation5], 1024  }
  0x25   :  { %550 = vsyncadd [#allocation5], 4294966272  ;;  %v58_v0 = vld [vmem:[%s677_s0] sm:$0xff]  ;;  %vm60_vm0 = vcmask 64512   ;;  %vm79_vm1 = vcmask 1043456   ;;  %v555_v4 = vmov 0.0   ;;  %v361_v43 = vlaneseq }
  0x26   :  { %v59_v1 = vmul.f32 %v58_v0, %v58_v0  ;;  %v68_v3 = vld [vmem:[%s678_s1] sm:$0xf]  ;;  %427 = vmatprep.subr.bf16.mxu0 %v555_v4  ;;  %vm556_vm2 = vmmov 0   ;;  %433 = vmatprep.subr.bf16.mxu1 %v555_v4  ;;  %v480_v7 = vld [vmem:[#allocation2 + $0x8] sm:$0xff]   ;;  %v481_v8 = vld [vmem:[#allocation2 + $0x10] sm:$0xff]  }
  0x27   :  { %v81_v5 = vsel %vm79_vm1, %v68_v3, 0  ;;  %429 = vmatprep.mubr.msk.bf16.mxu0 %vm556_vm2, %v555_v4  ;;  %449 = vmatprep.mubr.msk.bf16.mxu1 %vm556_vm2, %v555_v4  ;;  %v479_v6 = vld [vmem:[#allocation2] sm:$0xff]   ;;  %v482_v9 = vld [vmem:[#allocation2 + $0x18] sm:$0xff]   ;;  %v484_v11 = vld [vmem:[#allocation2 + $0x28] sm:$0xff]   ;;  %v362_v44 = vand.u32 127, %v361_v43 }
  0x28   :  { %v61_v2 = vsel %vm60_vm0, %v59_v1, 0.0  ;;  %428 = vmatpush3.bf16.msra.mxu0 %v81_v5  ;;  %434 = vmatpush3.bf16.msra.mxu1 %v479_v6  ;;  %v483_v10 = vld [vmem:[#allocation2 + $0x20] sm:$0xff]   ;;  %v485_v17 = vld [vmem:[#allocation2 + $0x30] sm:$0xff]   ;;  %v486_v18 = vld [vmem:[#allocation2 + $0x38] sm:$0xff]  }
  0x29   :  { %62 = vadd.xlane.f32.xlu0 %v61_v2  ;;  %453 = vmatprep.subr.bf16.mxu0 %v555_v4  ;;  %v487_v19 = vld [vmem:[#allocation4] sm:$0xff]   ;;  %v488_v20 = vld [vmem:[#allocation4 + $0x8] sm:$0xff]   ;;  %v489_v21 = vld [vmem:[#allocation4 + $0x10] sm:$0xff]   ;;  %vm363_vm3 = vcmp.lt.s32.totalorder %v362_v44, 4 }
  0x2a   :  { %435 = vmatprep.subr.bf16.mxu1 %v555_v4  ;;  %v490_v22 = vld [vmem:[#allocation4 + $0x18] sm:$0xff]   ;;  %v491_v23 = vld [vmem:[#allocation4 + $0x20] sm:$0xff]   ;;  %v492_v24 = vld [vmem:[#allocation4 + $0x28] sm:$0xff]  }
  0x2b   :  { %v386_v25 = vld [vmem:[%s679_s2] ss:$0 sm:$0xff]  ;;  %v493_v33 = vld [vmem:[#allocation4 + $0x30] sm:$0xff]   ;;  %v494_v34 = vld [vmem:[#allocation4 + $0x38] sm:$0xff]  }
  0x2c   :  { %436 = vmatpush3.bf16.msra.mxu1 %v480_v7  ;;  %v388_v35 = vld [vmem:[%s681_s4] ss:$0 sm:$0xff] }
  0x2d   :  { %437 = vmatprep.subr.bf16.mxu1 %v555_v4  ;;  %v397_v45 = vld [vmem:[%s683_s6] ss:$0 sm:$0xff] }
  0x2e   :  { %v406_v59 = vld [vmem:[%s684_s7] ss:$0 sm:$0xff] }
  0x30   :  { %438 = vmatpush3.bf16.msra.mxu1 %v481_v8 }
  0x31   :  { %439 = vmatprep.subr.bf16.mxu1 %v555_v4 }
  0x34   :  { %440 = vmatpush3.bf16.msra.mxu1 %v482_v9 }
  0x35   :  { %441 = vmatprep.subr.bf16.mxu1 %v555_v4 }
  0x38   :  { %442 = vmatpush3.bf16.msra.mxu1 %v483_v10 }
  0x39   :  { %443 = vmatprep.subr.bf16.mxu1 %v555_v4 }
  0x3c   :  { %444 = vmatpush3.bf16.msra.mxu1 %v484_v11 }
  0x3d   :  { %445 = vmatprep.subr.bf16.mxu1 %v555_v4 }
  0x40   :  { %446 = vmatpush3.bf16.msra.mxu1 %v485_v17 }
  0x41   :  { %447 = vmatprep.subr.bf16.mxu1 %v555_v4 }
  0x44   :  { %448 = vmatpush3.bf16.msra.mxu1 %v486_v18 }
  0xb6   :  { %v63_v12 = vpop.xlane.xlu0 %62 }
  0xb7   :  { %v64_v13 = vmax.f32 %v63_v12, 1e-24 }
  0xb9   :  { %495 = vrsqrt.f32 %v64_v13 }
  0xc3   :  { %v496_v14 = vpop.eup %495 }
  0xc4   :  { %v66_v15 = vmul.f32 %v496_v14, %v58_v0 }
  0xc6   :  { %v67_v16 = vpack.c.bf16 %v66_v15, %v66_v15 }
  0xc8   :  { %430 = vmatmul.mubr.msk.bf16.vlgmr.msra.gmra.mrb[0].mxu0 %vm60_vm0, %v67_v16 }
  0xc9   :  { %469 = vmatprep.mubr.msk.bf16.mxu0 %vm556_vm2, %v555_v4  ;;  %454 = vmatpush3.bf16.msra.mxu0 %v487_v19 }
  0xca   :  { %455 = vmatprep.subr.bf16.mxu0 %v555_v4 }
  0xcd   :  { %456 = vmatpush3.bf16.msra.mxu0 %v488_v20 }
  0xce   :  { %457 = vmatprep.subr.bf16.mxu0 %v555_v4 }
  0xd1   :  { %458 = vmatpush3.bf16.msra.mxu0 %v489_v21 }
  0xd2   :  { %459 = vmatprep.subr.bf16.mxu0 %v555_v4 }
  0xd5   :  { %460 = vmatpush3.bf16.msra.mxu0 %v490_v22 }
  0xd6   :  { %461 = vmatprep.subr.bf16.mxu0 %v555_v4 }
  0xd9   :  { %462 = vmatpush3.bf16.msra.mxu0 %v491_v23 }
  0xda   :  { %463 = vmatprep.subr.bf16.mxu0 %v555_v4 }
  0xdd   :  { %464 = vmatpush3.bf16.msra.mxu0 %v492_v24 }
  0xde   :  { %465 = vmatprep.subr.bf16.mxu0 %v555_v4 }
  0xe1   :  { %466 = vmatpush3.bf16.msra.mxu0 %v493_v33 }
  0xe2   :  { %467 = vmatprep.subr.bf16.mxu0 %v555_v4 }
  0xe5   :  { %468 = vmatpush3.bf16.msra.mxu0 %v494_v34 }
 0x19b   :  { %v117_v26 = vpop.f32.mrb[0].mxu0 }
 0x19c   :  { %v118_v27 = vadd.f32 %v386_v25, %v117_v26  ;;  %v431_v28 = vpop.f32.mrb[1].mxu0 }
 0x19d   :  { %v120_v29 = vpop.f32.mrb[2].mxu0 }
 0x19e   :  { %v123_v30 = vmax.f32 %v118_v27, 0.0  ;;  %v432_v31 = vpop.f32.mrb[3].mxu0 }
 0x1a0   :  { %v124_v32 = vpack.c.bf16 %v123_v30, %v123_v30 }
 0x1a2   :  { %450 = vmatmul.mubr.bf16.vlgmr.msra.gmra.mrb[0].mxu1 %v124_v32 }
 0x275   :  { %v230_v36 = vpop.f32.mrb[0].mxu1 }
 0x276   :  { %v231_v37 = vadd.f32 %v388_v35, %v230_v36  ;;  %v451_v38 = vpop.f32.mrb[1].mxu1 }
 0x277   :  { %v233_v39 = vpop.f32.mrb[2].mxu1 }
 0x278   :  { %v236_v40 = vmax.f32 %v231_v37, 0.0  ;;  %v452_v41 = vpop.f32.mrb[3].mxu1 }
 0x27a   :  { %v237_v42 = vpack.c.bf16 %v236_v40, %v236_v40 }
 0x27c   :  { %470 = vmatmul.mubr.bf16.vlgmr.msra.gmra.mrb[4].mxu0 %v237_v42 }
 0x34f   :  { %v343_v46 = vpop.f32.mrb[4].mxu0 }
 0x350   :  { %v344_v47 = vadd.f32 %v397_v45, %v343_v46  ;;  %v471_v48 = vpop.f32.mrb[5].mxu0 }
 0x351   :  { %v346_v49 = vpop.f32.mrb[6].mxu0 }
 0x352   :  { %v472_v50 = vpop.f32.mrb[7].mxu0  ;;  %v364_v51 = vsel %vm363_vm3, %v344_v47, -1e+30  ;;  %v349_v57 = vmax.f32 %v344_v47, 0.0 }
 0x353   :  { %v365_v52 = vsel %vm60_vm0, %v364_v51, -inf }
 0x354   :  { %366 = vmax.xlane.f32.xlu0 %v365_v52  ;;  %v357_v60 = vmul.f32 %v406_v59, %v349_v57 }
 0x3e1   :  { %v367_v53 = vpop.xlane.xlu0 %366 }
 0x3e2   :  { %v368_v54 = vsub.f32 %v364_v51, %v367_v53  ;;  %v374_v0 = vsub.f32 %v344_v47, %v367_v53 }
 0x3e4   :  { %v369_v55 = vmul.f32 1.442695, %v368_v54 }
 0x3e6   :  { %497 = vpow2.f32 %v369_v55 }
 0x3f0   :  { %v498_v56 = vpop.eup %497 }
 0x3f1   :  { %v371_v58 = vsel %vm60_vm0, %v498_v56, 0.0 }
 0x3f2   :  { %372 = vadd.xlane.f32.xlu1 %v371_v58 }
 0x3f6   :  { %358 = vadd.xlane.f32.xlu1 %v357_v60 }
 0x47f   :  { %v373_v61 = vpop.xlane.xlu1 %372 }
 0x480   :  { %499 = vlog2.f32 %v373_v61 }
 0x483   :  { %v359_v62 = vpop.xlane.xlu1 %358 }
 0x484   :  { %501 = vtanh.f32 %v359_v62 }
 0x48a   :  { %v500_v63 = vpop.eup %499 }
 0x48b   :  { %v376_v1 = vmul.f32 0.6931472, %v500_v63 }
 0x48d   :  { %v377_v2 = vsub.f32 %v374_v0, %v376_v1 }
 0x48e   :  { %v502_v3 = vpop.eup %501 }
 0x48f   :  { %v378_v4 = vsel %vm363_vm3, %v377_v2, %v502_v3 }
 0x490   :  { %379 = vst.msk [vmem:[%s685_s8] sm:$0xff] %vm60_vm0, %v378_v4 }
 0x491   :  { %384 = vsyncpa [#allocation3], 1 }
 0x492   :  { %385 = vsyncpa [#allocation5], 1 }

</bundles_post_ra>
